<compile_context>
chip_gen: v6e
topology: v6e:2x2x1
jax: 0.10.0
libtpu: 0.0.40
codegen_flags: <defaults>
</compile_context>

<pallas_src>
import jax
import jax.numpy as jnp
from jax.experimental import pallas as pl
from jax.experimental.pallas import tpu as pltpu


def _round_up(n, m):
    return ((n + m - 1) // m) * m


def _value_net_kernel(xt_ref, w1t_ref, b1_ref, w2t_ref, b2_ref, o_ref):
    """One batch tile, transposed layout.

    xt_ref : (K, Bt)   states, batch on the lane dimension
    w1t_ref: (H, K)    W1^T  (VMEM resident across the grid)
    b1_ref : (H, 1)    first-layer bias column (VMEM resident)
    w2t_ref: (1, H)    W2^T  (VMEM resident)
    b2_ref : (1, 1)    second-layer bias (VMEM resident, broadcast-added)
    o_ref  : (1, Bt)   values, batch on the lane dimension (lane-dense store)
    """
    xt = xt_ref[...]                        # (K, Bt)
    w1t = w1t_ref[...]                      # (H, K)
    K, Bt = xt.shape
    H = w1t.shape[0]

    # Hidden layer on the VPU: K (= state_dim = 4) is tiny, so a few broadcast
    # FMAs beat a K=4 MXU matmul.  Static Python loop -> fully unrolled.
    h = jnp.broadcast_to(b1_ref[...], (H, Bt))          # (H, Bt)
    for k in range(K):
        h = h + w1t[:, k:k + 1] * xt[k:k + 1, :]        # (H,1)*(1,Bt) -> (H,Bt)
    h = jnp.tanh(h)                                     # EUP

    # Output layer on the MXU: (1, H) @ (H, Bt) -> lane-dense (1, Bt).
    v = jnp.dot(w2t_ref[...], h, preferred_element_type=jnp.float32)
    o_ref[...] = (v + b2_ref[...]).astype(o_ref.dtype)  # (1,1) broadcasts over lanes


def value_network_forward(x, w1, b1, w2, b2, *, block_b=2048):
    """x: [B, state_dim] f32 -> [B, 1] f32 (same math as the PyTorch module).

    Params use the "math" layout (PyTorch weight.T):
      w1: [state_dim, H], b1: [H], w2: [H, 1], b2: [1]
    """
    B, K = x.shape
    H = w1.shape[1]

    # Batch rides the lane dimension; pad it up to a multiple of the tile width
    # (tile width itself is a multiple of 128 lanes).
    Bt = min(_round_up(block_b, 128), _round_up(B, 128))
    B_pad = _round_up(B, Bt)

    xt = jnp.pad(x.T, ((0, 0), (0, B_pad - B)))      # (K, B_pad)  layout plumbing
    w1t = w1.T                                       # (H, K)
    b1c = b1.reshape(H, 1)                           # (H, 1)
    w2t = w2.T                                       # (1, H)
    b2c = b2.reshape(1, 1)                           # (1, 1)

    grid = (B_pad // Bt,)

    vt = pl.pallas_call(
        _value_net_kernel,
        out_shape=jax.ShapeDtypeStruct((1, B_pad), jnp.float32),
        grid_spec=pltpu.PrefetchScalarGridSpec(
            num_scalar_prefetch=0,
            grid=grid,
            in_specs=[
                # x tile: streamed / double-buffered over the batch grid.
                pl.BlockSpec((K, Bt), lambda i: (0, i)),
                # Weights & biases: constant index_map -> fetched once, resident.
                pl.BlockSpec((H, K), lambda i: (0, 0)),
                pl.BlockSpec((H, 1), lambda i: (0, 0)),
                pl.BlockSpec((1, H), lambda i: (0, 0)),
                pl.BlockSpec((1, 1), lambda i: (0, 0)),
            ],
            out_specs=pl.BlockSpec((1, Bt), lambda i: (0, i)),
        ),
        compiler_params=pltpu.CompilerParams(
            dimension_semantics=("parallel",),       # shard batch tiles across TCs
        ),
    )(xt, w1t, b1c, w2t, b2c)

    return vt[:, :B].T                               # (B, 1)


def init_params(key, state_dim, hidden=128):
    """Deterministic init mimicking PyTorch nn.Linear defaults (+/- 1/sqrt(fan_in))."""
    k1, k2, k3, k4 = jax.random.split(key, 4)
    bound1 = 1.0 / float(state_dim) ** 0.5
    bound2 = 1.0 / float(hidden) ** 0.5
    w1 = jax.random.uniform(k1, (state_dim, hidden), jnp.float32, -bound1, bound1)
    b1 = jax.random.uniform(k2, (hidden,), jnp.float32, -bound1, bound1)
    w2 = jax.random.uniform(k3, (hidden, 1), jnp.float32, -bound2, bound2)
    b2 = jax.random.uniform(k4, (1,), jnp.float32, -bound2, bound2)
    return w1, b1, w2, b2


def reference_forward(x, w1, b1, w2, b2):
    h = jnp.tanh(x @ w1 + b1[None, :])
    return h @ w2 + b2[None, :]


if __name__ == "__main__":
    key = jax.random.PRNGKey(0)
    kx_small, kx_big, kp = jax.random.split(key, 3)

    state_dim = 4  # CartPole observation dim
    w1, b1, w2, b2 = init_params(kp, state_dim)

    # Small batch (production-like PPO step), single-tile grid.
    x_small = jax.random.normal(kx_small, (8, state_dim), dtype=jnp.float32)
    out_small = jax.block_until_ready(value_network_forward(x_small, w1, b1, w2, b2))
    ref_small = reference_forward(x_small, w1, b1, w2, b2)
    assert out_small.shape == (8, 1)
    assert jnp.allclose(out_small, ref_small, atol=1e-5, rtol=1e-5), "mismatch at batch=8"

    # Larger batch with a small tile to exercise the multi-tile pipelined path.
    x_big = jax.random.normal(kx_big, (1024, state_dim), dtype=jnp.float32)
    out_big = jax.block_until_ready(
        value_network_forward(x_big, w1, b1, w2, b2, block_b=256))
    ref_big = reference_forward(x_big, w1, b1, w2, b2)
    assert out_big.shape == (1024, 1)
    assert jnp.allclose(out_big, ref_big, atol=1e-5, rtol=1e-5), "mismatch at batch=1024"

    print("KERNEL_OK")
</pallas_src>

<mosaic_0001>
module attributes {stable_mosaic.version = 11 : i64} {
  func.func @_value_net_kernel(%arg0: i32, %arg1: memref<4x128xf32, #tpu.memory_space<vmem>>, %arg2: memref<128x4xf32, #tpu.memory_space<vmem>>, %arg3: memref<128x1xf32, #tpu.memory_space<vmem>>, %arg4: memref<1x128xf32, #tpu.memory_space<vmem>>, %arg5: memref<1x1xf32, #tpu.memory_space<vmem>>, %arg6: memref<1x128xf32, #tpu.memory_space<vmem>>) attributes {dimension_semantics = [#tpu.dimension_semantics<parallel>], iteration_bounds = array<i64: 1>, scalar_prefetch = 0 : i64, scratch_operands = 0 : i64, tpu.core_type = #tpu.core_type<tc>, window_params = [{transform_indices = @transform_0, window_bounds = array<i64: 4, 128>}, {pipeline_mode = #tpu.pipeline_mode<synchronous>, transform_indices = @transform_1, window_bounds = array<i64: 128, 4>}, {pipeline_mode = #tpu.pipeline_mode<synchronous>, transform_indices = @transform_2, window_bounds = array<i64: 128, 1>}, {pipeline_mode = #tpu.pipeline_mode<synchronous>, transform_indices = @transform_3, window_bounds = array<i64: 1, 128>}, {pipeline_mode = #tpu.pipeline_mode<synchronous>, transform_indices = @transform_4, window_bounds = array<i64: 1, 1>}, {transform_indices = @transform_5, window_bounds = array<i64: 1, 128>}]} {
    %c0 = arith.constant 0 : index
    %c0_0 = arith.constant 0 : index
    %0 = vector.load %arg1[%c0, %c0_0] : memref<4x128xf32, #tpu.memory_space<vmem>>, vector<4x128xf32>
    %c0_1 = arith.constant 0 : index
    %c0_2 = arith.constant 0 : index
    %1 = vector.load %arg2[%c0_1, %c0_2] : memref<128x4xf32, #tpu.memory_space<vmem>>, vector<128x4xf32>
    %c0_3 = arith.constant 0 : index
    %c0_4 = arith.constant 0 : index
    %2 = vector.load %arg3[%c0_3, %c0_4] : memref<128x1xf32, #tpu.memory_space<vmem>>, vector<128x1xf32>
    %3 = vector.shape_cast %2 : vector<128x1xf32> to vector<128x1xf32>
    %4 = vector.broadcast %3 : vector<128x1xf32> to vector<128x128xf32>
    %5 = vector.extract_strided_slice %1 {offsets = [0, 0], sizes = [128, 1], strides = [1, 1]} : vector<128x4xf32> to vector<128x1xf32>
    %6 = vector.extract_strided_slice %0 {offsets = [0, 0], sizes = [1, 128], strides = [1, 1]} : vector<4x128xf32> to vector<1x128xf32>
    %7 = vector.broadcast %5 : vector<128x1xf32> to vector<128x128xf32>
    %8 = vector.broadcast %6 : vector<1x128xf32> to vector<128x128xf32>
    %9 = arith.mulf %7, %8 : vector<128x128xf32>
    %10 = arith.addf %4, %9 : vector<128x128xf32>
    %11 = vector.extract_strided_slice %1 {offsets = [0, 1], sizes = [128, 1], strides = [1, 1]} : vector<128x4xf32> to vector<128x1xf32>
    %12 = vector.extract_strided_slice %0 {offsets = [1, 0], sizes = [1, 128], strides = [1, 1]} : vector<4x128xf32> to vector<1x128xf32>
    %13 = vector.broadcast %11 : vector<128x1xf32> to vector<128x128xf32>
    %14 = vector.broadcast %12 : vector<1x128xf32> to vector<128x128xf32>
    %15 = arith.mulf %13, %14 : vector<128x128xf32>
    %16 = arith.addf %10, %15 : vector<128x128xf32>
    %17 = vector.extract_strided_slice %1 {offsets = [0, 2], sizes = [128, 1], strides = [1, 1]} : vector<128x4xf32> to vector<128x1xf32>
    %18 = vector.extract_strided_slice %0 {offsets = [2, 0], sizes = [1, 128], strides = [1, 1]} : vector<4x128xf32> to vector<1x128xf32>
    %19 = vector.broadcast %17 : vector<128x1xf32> to vector<128x128xf32>
    %20 = vector.broadcast %18 : vector<1x128xf32> to vector<128x128xf32>
    %21 = arith.mulf %19, %20 : vector<128x128xf32>
    %22 = arith.addf %16, %21 : vector<128x128xf32>
    %23 = vector.extract_strided_slice %1 {offsets = [0, 3], sizes = [128, 1], strides = [1, 1]} : vector<128x4xf32> to vector<128x1xf32>
    %24 = vector.extract_strided_slice %0 {offsets = [3, 0], sizes = [1, 128], strides = [1, 1]} : vector<4x128xf32> to vector<1x128xf32>
    %25 = vector.broadcast %23 : vector<128x1xf32> to vector<128x128xf32>
    %26 = vector.broadcast %24 : vector<1x128xf32> to vector<128x128xf32>
    %27 = arith.mulf %25, %26 : vector<128x128xf32>
    %28 = arith.addf %22, %27 : vector<128x128xf32>
    %29 = math.tanh %28 : vector<128x128xf32>
    %c0_5 = arith.constant 0 : index
    %c0_6 = arith.constant 0 : index
    %30 = vector.load %arg4[%c0_5, %c0_6] : memref<1x128xf32, #tpu.memory_space<vmem>>, vector<1x128xf32>
    %cst = arith.constant dense<0.000000e+00> : vector<1x128xf32>
    %31 = tpu.matmul %30, %29, %cst {dimension_numbers = #tpu.dot_dimension_numbers<[1], [0], [0], [1], [0, 0, 1, 1], [], []>} : vector<1x128xf32>, vector<128x128xf32>, vector<1x128xf32> -> vector<1x128xf32>
    %c0_7 = arith.constant 0 : index
    %c0_8 = arith.constant 0 : index
    %32 = vector.load %arg5[%c0_7, %c0_8] : memref<1x1xf32, #tpu.memory_space<vmem>>, vector<1x1xf32>
    %33 = vector.broadcast %32 : vector<1x1xf32> to vector<1x128xf32>
    %34 = arith.addf %31, %33 : vector<1x128xf32>
    %c0_9 = arith.constant 0 : index
    %c0_10 = arith.constant 0 : index
    %35 = vector.load %arg6[%c0_9, %c0_10] : memref<1x128xf32, #tpu.memory_space<vmem>>, vector<1x128xf32>
    tpu.vector_store %arg6[%c0_9, %c0_10], %34 {strides = array<i32>} : memref<1x128xf32, #tpu.memory_space<vmem>>, vector<1x128xf32>,
    return
  }
  func.func @transform_0(%arg0: i32) -> (i32, i32) {
    %c0_i32 = arith.constant 0 : i32
    %c0_i32_0 = arith.constant 0 : i32
    return %c0_i32, %arg0 : i32, i32
  }
  func.func @transform_1(%arg0: i32) -> (i32, i32) {
    %c0_i32 = arith.constant 0 : i32
    %c0_i32_0 = arith.constant 0 : i32
    %c0_i32_1 = arith.constant 0 : i32
    return %c0_i32, %c0_i32_0 : i32, i32
  }
  func.func @transform_2(%arg0: i32) -> (i32, i32) {
    %c0_i32 = arith.constant 0 : i32
    %c0_i32_0 = arith.constant 0 : i32
    %c0_i32_1 = arith.constant 0 : i32
    return %c0_i32, %c0_i32_0 : i32, i32
  }
  func.func @transform_3(%arg0: i32) -> (i32, i32) {
    %c0_i32 = arith.constant 0 : i32
    %c0_i32_0 = arith.constant 0 : i32
    %c0_i32_1 = arith.constant 0 : i32
    return %c0_i32, %c0_i32_0 : i32, i32
  }
  func.func @transform_4(%arg0: i32) -> (i32, i32) {
    %c0_i32 = arith.constant 0 : i32
    %c0_i32_0 = arith.constant 0 : i32
    %c0_i32_1 = arith.constant 0 : i32
    return %c0_i32, %c0_i32_0 : i32, i32
  }
  func.func @transform_5(%arg0: i32) -> (i32, i32) {
    %c0_i32 = arith.constant 0 : i32
    %c0_i32_0 = arith.constant 0 : i32
    return %c0_i32, %arg0 : i32, i32
  }
}

</mosaic_0001>

<bundles_post_ra>
// kernel: tpu_custom_call.1
= control target key start
LH: loop header
LB: loop body
LE: loop exit
PB: predicated region body
PF: predicated region fallthrough
CT: control target
= control target key end

     0   :  { %s1271_s0 = inlined_call_operand.vmem [shape: f32[4,128], index: 0, kind: input, shape index: {}]   ;;  %s1272_s1 = inlined_call_operand.vmem [shape: f32[128,4], index: 1, kind: input, shape index: {}]   ;;  %s1273_s2 = inlined_call_operand.vmem [shape: f32[128,1], index: 2, kind: input, shape index: {}]   ;;  %s1274_s3 = inlined_call_operand.vmem [shape: f32[1,128], index: 3, kind: input, shape index: {}]   ;;  %s1275_s4 = inlined_call_operand.<no memory space> [shape: f32[1,1], index: 4, kind: input, shape index: {}]   ;;  %s1276_s5 = inlined_call_operand.hbm [shape: f32[1,128], index: 5, kind: output, shape index: {}]  }
   0x1   :  { %v10_v0 = vstv %s1275_s4 }
   0x2   :  { %11 = vst [vmem:[#allocation2] sm:$0x1] %v10_v0 }
   0x3   :  { %v42_v1 = vld [vmem:[%s1273_s2 + $0x10] sm:$0xff]  ;;  %v40_v2 = vld [vmem:[%s1273_s2] sm:$0xff]  ;;  %v827_v3 = vmov 0   ;;  %v41_v4 = vld [vmem:[%s1273_s2 + $0x8] sm:$0xff] }
   0x4   :  { %724 = vset.pattern.permute.xlu1 %v827_v3  ;;  %723 = vset.pattern.permute.xlu0 %v827_v3  ;;  %v881_v5 = vld [vmem:[%s1272_s1 + $0x78] sm:$0xff]  ;;  %v890_v7 = vld [vmem:[%s1272_s1 + $0x70] sm:$0xff] }
   0x5   :  { %68 = vperm.xlu1 %724, %v42_v1   ;;  %58 = vperm.xlu0 %723, %v40_v2   ;;  %v55_v6 = vld [vmem:[%s1273_s2 + $0x78] sm:$0xff] }
   0x9   :  { %63 = vperm.xlu0 %723, %v41_v4   ;;  %213 = vperm.xlu1 %724, %v881_v5  }
   0xa   :  { %12 = vsyncpa [#allocation4], 0  ;;  %v53_v8 = vld [vmem:[%s1273_s2 + $0x68] sm:$0xff]  ;;  %v54_v9 = vld [vmem:[%s1273_s2 + $0x70] sm:$0xff]  ;;  %v828_v13 = vmov 2   ;;  %v829_v18 = vmov 1  }
   0xb   :  { %v37_v10 = vld [vmem:[%s1272_s1 + $0x68] sm:$0xff]  ;;  %v905_v11 = vld [vmem:[%s1272_s1 + $0x58] sm:$0xff]  ;;  %v50_v12 = vld [vmem:[%s1273_s2 + $0x50] sm:$0xff]  ;;  %v830_v20 = vmov 3   ;;  %v831_v29 = vmov 0.0   ;;  %vm832_vm0 = vmmov 0  }
   0xc   :  { %v32_v14 = vld [vmem:[%s1272_s1 + $0x40] sm:$0xff]  ;;  %v47_v16 = vld [vmem:[%s1273_s2 + $0x38] sm:$0xff]  ;;  %v29_v17 = vld [vmem:[%s1272_s1 + $0x28] sm:$0xff]  ;;  %681 = vmatprep.subr.mxu0 %v831_v29  ;;  %713 = vmatprep.mubr.msk.f32.mxu0 %vm832_vm0, %v831_v29  ;;  %s833_s7 = smov [#allocation3]  }
   0xd   :  { %133 = vperm.xlu0 %723, %v55_v6   ;;  %208 = vperm.xlu1 %724, %v890_v7   ;;  %v36_v15 = vld [vmem:[%s1272_s1 + $0x60] sm:$0xff]  ;;  %v935_v21 = vld [vmem:[%s1272_s1 + $0x10] sm:$0xff]  ;;  %v51_v23 = vld [vmem:[%s1273_s2 + $0x58] sm:$0xff]  ;;  %v216_v6 = vlaneseq  ;;  %s656_s8 = sshll.u32 %s833_s7, 4  ;;  %s657_s8 = int_to_ptr.vmem [resolvable:$true] %s656_s8 }
   0xe   :  { %v44_v19 = vld [vmem:[%s1273_s2 + $0x20] sm:$0xff]  ;;  %v34_v24 = vld [vmem:[%s1272_s1 + $0x50] sm:$0xff]  ;;  %v33_v25 = vld [vmem:[%s1272_s1 + $0x48] sm:$0xff]  ;;  %s805_s9 = scalar_lea.vmem %s657_s8, 16  ;;  %s809_s10 = scalar_lea.vmem %s657_s8, 32 }
   0xf   :  { %v52_v22 = vld [vmem:[%s1273_s2 + $0x60] sm:$0xff]  ;;  %v966_v26 = vld [vmem:[%s1272_s1 + $0x18] sm:$0xff]  ;;  %v49_v27 = vld [vmem:[%s1273_s2 + $0x48] sm:$0xff]  ;;  %p806_p0 = scmp.ne.s32.totalorder %s657_s8, %s805_s9  ;;  %p810_p1 = scmp.lt.s32.totalorder %s657_s8, %s657_s8 }
  0x10   :  { %v984_v28 = vld [vmem:[%s1272_s1 + $0x8] sm:$0xff]  ;;  %v48_v30 = vld [vmem:[%s1273_s2 + $0x40] sm:$0xff]  ;;  %v31_v32 = vld [vmem:[%s1272_s1 + $0x38] sm:$0xff]  ;;  %p811_p2 = scmp.lt.s32.totalorder %s809_s10, %s805_s9 }
  0x11   :  { %123 = vperm.xlu0 %723, %v53_v8   ;;  %128 = vperm.xlu1 %724, %v54_v9   ;;  %v995_v31 = vld [vmem:[%s1272_s1] sm:$0xff]  ;;  %v30_v33 = vld [vmem:[%s1272_s1 + $0x30] sm:$0xff]  ;;  %v45_v50 = vld [vmem:[%s1273_s2 + $0x28] sm:$0xff]  ;;  %v1095_v8 = vshrl.u32 %v216_v6, 7 }
  0x12   :  { %v46_v42 = vld [vmem:[%s1273_s2 + $0x30] sm:$0xff]  ;;  %v1060_v53 = vld [vmem:[%s1272_s1 + $0x20] sm:$0xff]  ;;  %v43_v4 = vld [vmem:[%s1273_s2 + $0x18] sm:$0xff]  ;;  %p812_p3 = por %p811_p2, %p810_p1 }
  0x14   :  { %p813_p4 = pnand %p812_p3, %p806_p0 }
  0x15   :  { %203 = vperm.xlu1 %724, %v37_v10   ;;  %193 = vperm.xlu0 %723, %v905_v11  }
  0x19   :  { %725 = vset.pattern.permute.xlu1 %v828_v13  ;;  %108 = vperm.xlu0 %723, %v50_v12  }
  0x1a   :  { %413 = vperm.xlu1 %725, %v881_v5  }
  0x1d   :  { %178 = vperm.xlu0 %723, %v32_v14  }
  0x1e   :  { %726 = vset.pattern.permute.xlu1 %v827_v3 }
  0x1f   :  { %198 = vperm.xlu1 %726, %v36_v15  }
  0x21   :  { %93 = vperm.xlu0 %723, %v47_v16   ;;  %v318_v16 = vsub.s32 1, %v1095_v8 }
  0x23   :  { %727 = vset.pattern.permute.xlu1 %v829_v18 }
  0x24   :  { %305 = vperm.xlu1 %727, %v37_v10  }
  0x25   :  { %163 = vperm.xlu0 %723, %v29_v17  }
  0x28   :  { %728 = vset.pattern.permute.xlu1 %v830_v20 }
  0x29   :  { %513 = vperm.xlu1 %728, %v881_v5   ;;  %78 = vperm.xlu0 %723, %v44_v19   ;;  %v418_v19 = vsub.s32 2, %v1095_v8 }
  0x2d   :  { %729 = vset.pattern.permute.xlu1 %v827_v3  ;;  %148 = vperm.xlu0 %723, %v935_v21  }
  0x2e   :  { %118 = vperm.xlu1 %729, %v52_v22  }
  0x31   :  { %757 = vset.pattern.permute.xlu0 %v830_v20 }
  0x32   :  { %730 = vset.pattern.permute.xlu1 %v829_v18  ;;  %509 = vperm.xlu0 %757, %v890_v7  }
  0x33   :  { %301 = vperm.xlu1 %730, %v36_v15  }
  0x36   :  { %497 = vperm.xlu0 %757, %v905_v11  }
  0x37   :  { %731 = vset.pattern.permute.xlu1 %v828_v13 }
  0x38   :  { %405 = vperm.xlu1 %731, %v37_v10  }
  0x3a   :  { %485 = vperm.xlu0 %757, %v32_v14  }
  0x3c   :  { %732 = vset.pattern.permute.xlu1 %v827_v3 }
  0x3d   :  { %113 = vperm.xlu1 %732, %v51_v23   ;;  %v518_v23 = vsub.s32 3, %v1095_v8 }
  0x3e   :  { %473 = vperm.xlu0 %757, %v29_v17  }
  0x41   :  { %188 = vperm.xlu1 %732, %v34_v24  }
  0x42   :  { %760 = vset.pattern.permute.xlu0 %v828_v13 }
  0x43   :  { %409 = vperm.xlu0 %760, %v890_v7  }
  0x45   :  { %733 = vset.pattern.permute.xlu1 %v828_v13 }
  0x46   :  { %401 = vperm.xlu1 %733, %v36_v15  }
  0x47   :  { %397 = vperm.xlu0 %760, %v905_v11  }
  0x4a   :  { %734 = vset.pattern.permute.xlu1 %v830_v20 }
  0x4b   :  { %505 = vperm.xlu1 %734, %v37_v10   ;;  %385 = vperm.xlu0 %760, %v32_v14  }
  0x4f   :  { %735 = vset.pattern.permute.xlu1 %v827_v3  ;;  %373 = vperm.xlu0 %760, %v29_v17  }
  0x50   :  { %183 = vperm.xlu1 %735, %v33_v25  }
  0x53   :  { %365 = vperm.xlu0 %760, %v966_v26  }
  0x54   :  { %736 = vset.pattern.permute.xlu1 %v829_v18 }
  0x55   :  { %293 = vperm.xlu1 %736, %v34_v24  }
  0x57   :  { %763 = vset.pattern.permute.xlu0 %v829_v18 }
  0x58   :  { %313 = vperm.xlu0 %763, %v881_v5  }
  0x59   :  { %737 = vset.pattern.permute.xlu1 %v830_v20 }
  0x5a   :  { %501 = vperm.xlu1 %737, %v36_v15  }
  0x5c   :  { %309 = vperm.xlu0 %763, %v890_v7  }
  0x5e   :  { %738 = vset.pattern.permute.xlu1 %v827_v3 }
  0x5f   :  { %103 = vperm.xlu1 %738, %v49_v27  }
  0x60   :  { %297 = vperm.xlu0 %763, %v905_v11   ;;  %v218_v11 = vsub.s32 0, %v1095_v8 }
  0x63   :  { %739 = vset.pattern.permute.xlu1 %v829_v18 }
  0x64   :  { %289 = vperm.xlu1 %739, %v33_v25   ;;  %285 = vperm.xlu0 %763, %v32_v14   ;;  %v23_v14 = vld [vmem:[%s1271_s0] sm:$0xf] }
  0x68   :  { %740 = vset.pattern.permute.xlu1 %v828_v13  ;;  %273 = vperm.xlu0 %763, %v29_v17   ;;  %v1113_v17 = vrot.slane %v23_v14, %v218_v11 }
  0x69   :  { %393 = vperm.xlu1 %740, %v34_v24  }
  0x6c   :  { %257 = vperm.xlu0 %763, %v984_v28  }
  0x6d   :  { %741 = vset.pattern.permute.xlu1 %v827_v3 }
  0x6e   :  { %98 = vperm.xlu1 %741, %v48_v30   ;;  %v1127_v30 = vrot.slane %v23_v14, %v418_v19 }
  0x70   :  { %253 = vperm.xlu0 %763, %v995_v31  }
  0x72   :  { %173 = vperm.xlu1 %741, %v31_v32  }
  0x74   :  { %769 = vset.pattern.permute.xlu0 %v830_v20 }
  0x75   :  { %461 = vperm.xlu0 %769, %v935_v21  }
  0x76   :  { %742 = vset.pattern.permute.xlu1 %v828_v13 }
  0x77   :  { %389 = vperm.xlu1 %742, %v33_v25  }
  0x79   :  { %453 = vperm.xlu0 %769, %v995_v31  }
  0x7b   :  { %743 = vset.pattern.permute.xlu1 %v830_v20 }
  0x7c   :  { %493 = vperm.xlu1 %743, %v34_v24  }
  0x7d   :  { %772 = vset.pattern.permute.xlu0 %v827_v3 }
  0x80   :  { %v1010_v34 = vpop.permute.xlu1 %68  ;;  %v1012_v35 = vpop.permute.xlu0 %58  ;;  %744 = vset.pattern.permute.xlu1 %v827_v3 }
  0x81   :  { %168 = vperm.xlu1 %744, %v30_v33  }
  0x84   :  { %v1015_v36 = vpop.permute.xlu0 %63  ;;  %v1017_v37 = vpop.permute.xlu1 %213 }
  0x85   :  { %745 = vset.pattern.permute.xlu1 %v829_v18  ;;  %v235_v27 = vmul.f32 %v1113_v17, %v1017_v37 }
  0x86   :  { %281 = vperm.xlu1 %745, %v31_v32  }
  0x88   :  { %v1020_v38 = vpop.permute.xlu0 %133  ;;  %v1022_v39 = vpop.permute.xlu1 %208 }
  0x8a   :  { %746 = vset.pattern.permute.xlu1 %v830_v20 }
  0x8b   :  { %489 = vperm.xlu1 %746, %v33_v25   ;;  %v1123_v25 = vrot.slane %v23_v14, %v318_v16 }
  0x8c   :  { %v1025_v40 = vpop.permute.xlu0 %123  ;;  %v1027_v41 = vpop.permute.xlu1 %128 }
  0x8f   :  { %747 = vset.pattern.permute.xlu1 %v827_v3 }
  0x90   :  { %v1033_v43 = vpop.permute.xlu1 %203  ;;  %v1035_v44 = vpop.permute.xlu0 %193  ;;  %88 = vperm.xlu1 %747, %v46_v42   ;;  %v251_v42 = vadd.f32 %v235_v27, %v1020_v38 }
  0x91   :  { %v231_v38 = vmul.f32 %v1113_v17, %v1035_v44 }
  0x94   :  { %v1037_v45 = vpop.permute.xlu0 %108  ;;  %748 = vset.pattern.permute.xlu1 %v829_v18 }
  0x95   :  { %v1040_v46 = vpop.permute.xlu1 %413  ;;  %277 = vperm.xlu1 %748, %v30_v33  }
  0x98   :  { %v1042_v47 = vpop.permute.xlu0 %178 }
  0x99   :  { %749 = vset.pattern.permute.xlu1 %v828_v13 }
  0x9a   :  { %v1045_v48 = vpop.permute.xlu1 %198  ;;  %381 = vperm.xlu1 %749, %v31_v32  }
  0x9c   :  { %v1047_v49 = vpop.permute.xlu0 %93 }
  0x9e   :  { %750 = vset.pattern.permute.xlu1 %v827_v3 }
  0x9f   :  { %v1053_v51 = vpop.permute.xlu1 %305  ;;  %83 = vperm.xlu1 %750, %v45_v50   ;;  %v234_v50 = vmul.f32 %v1113_v17, %v1022_v39  ;;  %v435_v39 = vmul.f32 %v1127_v30, %v1040_v46 }
  0xa0   :  { %v1055_v52 = vpop.permute.xlu0 %163  ;;  %v333_v37 = vmul.f32 %v1123_v25, %v1053_v51 }
  0xa3   :  { %158 = vperm.xlu1 %750, %v1060_v53  }
  0xa4   :  { %v1063_v54 = vpop.permute.xlu1 %513  ;;  %v1065_v55 = vpop.permute.xlu0 %78 }
  0xa7   :  { %751 = vset.pattern.permute.xlu1 %v828_v13 }
  0xa8   :  { %377 = vperm.xlu1 %751, %v30_v33   ;;  %v1068_v56 = vpop.permute.xlu0 %148 }
  0xa9   :  { %v1070_v57 = vpop.permute.xlu1 %118 }
  0xac   :  { %752 = vset.pattern.permute.xlu1 %v830_v20 }
  0xad   :  { %481 = vperm.xlu1 %752, %v31_v32   ;;  %v1073_v58 = vpop.permute.xlu0 %509  ;;  %v233_v32 = vmul.f32 %v1113_v17, %v1033_v43  ;;  %v250_v43 = vadd.f32 %v234_v50, %v1027_v41 }
  0xae   :  { %v302_v59 = vpop.permute.xlu1 %301 }
  0xaf   :  { %v249_v19 = vadd.f32 %v233_v32, %v1025_v40 }
  0xb1   :  { %753 = vset.pattern.permute.xlu1 %v827_v3  ;;  %v1076_v60 = vpop.permute.xlu0 %497  ;;  %v349_v46 = vadd.f32 %v333_v37, %v249_v19 }
  0xb2   :  { %153 = vperm.xlu1 %753, %v966_v26  }
  0xb3   :  { %v406_v61 = vpop.permute.xlu1 %405 }
  0xb4   :  { %v433_v51 = vmul.f32 %v1127_v30, %v406_v61 }
  0xb5   :  { %v1079_v62 = vpop.permute.xlu0 %485 }
  0xb6   :  { %754 = vset.pattern.permute.xlu1 %v829_v18 }
  0xb7   :  { %269 = vperm.xlu1 %754, %v1060_v53  }
  0xb8   :  { %v1083_v63 = vpop.permute.xlu1 %113 }
  0xb9   :  { %v1085_v0 = vpop.permute.xlu0 %473  ;;  %v247_v37 = vadd.f32 %v231_v38, %v1083_v63 }
  0xbb   :  { %755 = vset.pattern.permute.xlu1 %v830_v20 }
  0xbc   :  { %v1088_v1 = vpop.permute.xlu1 %188  ;;  %477 = vperm.xlu1 %755, %v30_v33  }
  0xbe   :  { %v410_v2 = vpop.permute.xlu0 %409 }
  0xc0   :  { %756 = vset.pattern.permute.xlu1 %v827_v3 }
  0xc1   :  { %v402_v5 = vpop.permute.xlu1 %401  ;;  %73 = vperm.xlu1 %756, %v43_v4   ;;  %v1134_v4 = vrot.slane %v23_v14, %v518_v23  ;;  %v332_v23 = vmul.f32 %v1123_v25, %v302_v59 }
  0xc2   :  { %v398_v7 = vpop.permute.xlu0 %397 }
  0xc3   :  { %v535_v41 = vmul.f32 %v1134_v4, %v1063_v54  ;;  %v534_v40 = vmul.f32 %v1134_v4, %v1073_v58 }
  0xc5   :  { %758 = vset.pattern.permute.xlu1 %v829_v18 }
  0xc6   :  { %v506_v9 = vpop.permute.xlu1 %505  ;;  %265 = vperm.xlu1 %758, %v966_v26   ;;  %v1098_v10 = vpop.permute.xlu0 %385 }
  0xc7   :  { %v533_v59 = vmul.f32 %v1134_v4, %v506_v9  ;;  %v531_v9 = vmul.f32 %v1134_v4, %v1076_v60 }
  0xca   :  { %759 = vset.pattern.permute.xlu1 %v828_v13  ;;  %v1102_v12 = vpop.permute.xlu0 %373 }
  0xcb   :  { %v1107_v15 = vpop.permute.xlu1 %183  ;;  %369 = vperm.xlu1 %759, %v1060_v53  }
  0xce   :  { %v1116_v22 = vpop.permute.xlu0 %365 }
  0xcf   :  { %761 = vset.pattern.permute.xlu1 %v827_v3 }
  0xd0   :  { %v1120_v24 = vpop.permute.xlu1 %293  ;;  %143 = vperm.xlu1 %761, %v984_v28  }
  0xd3   :  { %v314_v33 = vpop.permute.xlu0 %313 }
  0xd4   :  { %v335_v6 = vmul.f32 %v1123_v25, %v314_v33  ;;  %762 = vset.pattern.permute.xlu1 %v829_v18  ;;  %v232_v18 = vmul.f32 %v1113_v17, %v1045_v48  ;;  %v434_v33 = vmul.f32 %v1127_v30, %v410_v2  ;;  %v432_v48 = vmul.f32 %v1127_v30, %v402_v5 }
  0xd5   :  { %v502_v16 = vpop.permute.xlu1 %501  ;;  %261 = vperm.xlu1 %762, %v935_v21  }
  0xd6   :  { %v351_v14 = vadd.f32 %v335_v6, %v251_v42  ;;  %v248_v42 = vadd.f32 %v232_v18, %v1070_v57  ;;  %v449_v6 = vadd.f32 %v433_v51, %v349_v46  ;;  %v431_v57 = vmul.f32 %v1127_v30, %v398_v7 }
  0xd7   :  { %v310_v27 = vpop.permute.xlu0 %309  ;;  %v532_v58 = vmul.f32 %v1134_v4, %v502_v16  ;;  %v228_v51 = vmul.f32 %v1113_v17, %v1042_v47 }
  0xd8   :  { %v451_v44 = vadd.f32 %v435_v39, %v351_v14  ;;  %v334_v50 = vmul.f32 %v1123_v25, %v310_v27  ;;  %v348_v2 = vadd.f32 %v332_v23, %v248_v42  ;;  %v549_v19 = vadd.f32 %v533_v59, %v449_v6 }
  0xd9   :  { %764 = vset.pattern.permute.xlu1 %v830_v20 }
  0xda   :  { %v551_v61 = vadd.f32 %v535_v41, %v451_v44  ;;  %v350_v32 = vadd.f32 %v334_v50, %v250_v43  ;;  %v1161_v54 = vpop.permute.xlu1 %103  ;;  %469 = vperm.xlu1 %764, %v1060_v53   ;;  %v448_v43 = vadd.f32 %v432_v48, %v348_v2  ;;  %v428_v44 = vmul.f32 %v1127_v30, %v1098_v10 }
  0xdb   :  { %v298_v39 = vpop.permute.xlu0 %297  ;;  %v230_v10 = vmul.f32 %v1113_v17, %v1088_v1 }
  0xdc   :  { %773 = vtanh.f32 %v551_v61  ;;  %v450_v14 = vadd.f32 %v434_v33, %v350_v32  ;;  %v331_v5 = vmul.f32 %v1123_v25, %v298_v39  ;;  %v548_v63 = vadd.f32 %v532_v58, %v448_v43 }
  0xdd   :  { %v246_v32 = vadd.f32 %v230_v10, %v1037_v45  ;;  %v229_v45 = vmul.f32 %v1113_v17, %v1107_v15 }
  0xde   :  { %v550_v18 = vadd.f32 %v534_v40, %v450_v14  ;;  %v347_v53 = vadd.f32 %v331_v5, %v247_v37  ;;  %765 = vset.pattern.permute.xlu1 %v827_v3 }
  0xdf   :  { %v290_v23 = vpop.permute.xlu1 %289  ;;  %138 = vperm.xlu1 %765, %v995_v31   ;;  %v286_v60 = vpop.permute.xlu0 %285  ;;  %v245_v14 = vadd.f32 %v229_v45, %v1161_v54 }
  0xe0   :  { %775 = vtanh.f32 %v550_v18  ;;  %v447_v7 = vadd.f32 %v431_v57, %v347_v53  ;;  %v328_v27 = vmul.f32 %v1123_v25, %v286_v60  ;;  %v329_v39 = vmul.f32 %v1123_v25, %v290_v23 }
  0xe1   :  { %777 = vtanh.f32 %v549_v19 }
  0xe2   :  { %v547_v16 = vadd.f32 %v531_v9, %v447_v7  ;;  %779 = vtanh.f32 %v548_v63  ;;  %v345_v5 = vadd.f32 %v329_v39, %v245_v14  ;;  %v225_v7 = vmul.f32 %v1113_v17, %v1055_v52 }
  0xe3   :  { %766 = vset.pattern.permute.xlu1 %v828_v13  ;;  %v274_v23 = vpop.permute.xlu0 %273 }
  0xe4   :  { %v394_v38 = vpop.permute.xlu1 %393  ;;  %361 = vperm.xlu1 %766, %v935_v21   ;;  %781 = vtanh.f32 %v547_v16  ;;  %v528_v21 = vmul.f32 %v1134_v4, %v1079_v62  ;;  %v330_v62 = vmul.f32 %v1123_v25, %v1120_v24  ;;  %v325_v16 = vmul.f32 %v1123_v25, %v274_v23 }
  0xe5   :  { %v430_v2 = vmul.f32 %v1127_v30, %v394_v38 }
  0xe6   :  { %v346_v1 = vadd.f32 %v330_v62, %v246_v32 }
  0xe8   :  { %767 = vset.pattern.permute.xlu1 %v830_v20  ;;  %v446_v24 = vadd.f32 %v430_v2, %v346_v1 }
  0xe9   :  { %v774_v41 = vpop.eup %773  ;;  %v99_v33 = vpop.permute.xlu1 %98  ;;  %465 = vperm.xlu1 %767, %v966_v26  }
  0xea   :  { %v244_v50 = vadd.f32 %v228_v51, %v99_v33  ;;  %682 = vmatpush3.msra.mxu0 %v774_v41  ;;  %v425_v51 = vmul.f32 %v1127_v30, %v1102_v12  ;;  %v525_v41 = vmul.f32 %v1134_v4, %v1085_v0 }
  0xeb   :  { %683 = vmatprep.subr.mxu0 %v831_v29 }
  0xec   :  { %v344_v47 = vadd.f32 %v328_v27, %v244_v50 }
  0xed   :  { %v776_v46 = vpop.eup %775  ;;  %v1184_v42 = vpop.permute.xlu1 %173  ;;  %768 = vset.pattern.permute.xlu1 %v828_v13 }
  0xee   :  { %v444_v40 = vadd.f32 %v428_v44, %v344_v47  ;;  %357 = vperm.xlu1 %768, %v984_v28   ;;  %684 = vmatpush3.msra.mxu0 %v776_v46  ;;  %v778_v26 = vpop.eup %777  ;;  %v227_v50 = vmul.f32 %v1113_v17, %v1184_v42 }
  0xef   :  { %685 = vmatprep.subr.mxu0 %v831_v29  ;;  %v780_v59 = vpop.eup %779 }
  0xf0   :  { %v544_v48 = vadd.f32 %v528_v21, %v444_v40  ;;  %686 = vmatpush3.msra.mxu0 %v778_v26  ;;  %v243_v40 = vadd.f32 %v227_v50, %v1047_v49 }
  0xf1   :  { %687 = vmatprep.subr.mxu0 %v831_v29  ;;  %v782_v13 = vpop.eup %781 }
  0xf2   :  { %v390_v61 = vpop.permute.xlu1 %389  ;;  %353 = vperm.xlu1 %768, %v995_v31   ;;  %688 = vmatpush3.msra.mxu0 %v780_v59 }
  0xf3   :  { %689 = vmatprep.subr.mxu0 %v831_v29 }
  0xf4   :  { %690 = vmatpush3.msra.mxu0 %v782_v13 }
  0xf5   :  { %691 = vmatprep.subr.mxu0 %v831_v29 }
  0xf6   :  { %770 = vset.pattern.permute.xlu1 %v830_v20  ;;  %v429_v20 = vmul.f32 %v1127_v30, %v390_v61 }
  0xf7   :  { %v494_v6 = vpop.permute.xlu1 %493  ;;  %457 = vperm.xlu1 %770, %v984_v28  }
  0xf8   :  { %v530_v31 = vmul.f32 %v1134_v4, %v494_v6  ;;  %v445_v9 = vadd.f32 %v429_v20, %v345_v5 }
  0xfa   :  { %v546_v37 = vadd.f32 %v530_v31, %v446_v24 }
  0xfb   :  { %771 = vset.pattern.permute.xlu1 %v827_v3  ;;  %v569_v3 = vld [vmem:[#allocation2] sm:$0x1] }
  0xfc   :  { %783 = vtanh.f32 %v546_v37  ;;  %v169_v57 = vpop.permute.xlu1 %168  ;;  %572 = vperm.xlu1 %771, %v569_v3  }
  0xfd   :  { %v226_v61 = vmul.f32 %v1113_v17, %v169_v57 }
 0x101   :  { %v282_v58 = vpop.permute.xlu1 %281 }
 0x102   :  { %v327_v47 = vmul.f32 %v1123_v25, %v282_v58 }
 0x104   :  { %v343_v26 = vadd.f32 %v327_v47, %v243_v40 }
 0x106   :  { %v490_v28 = vpop.permute.xlu1 %489 }
 0x107   :  { %v529_v43 = vmul.f32 %v1134_v4, %v490_v28 }
 0x109   :  { %v784_v19 = vpop.eup %783  ;;  %v545_v18 = vadd.f32 %v529_v43, %v445_v9 }
 0x10a   :  { %692 = vmatpush3.msra.mxu0 %v784_v19 }
 0x10b   :  { %785 = vtanh.f32 %v545_v18  ;;  %v89_v15 = vpop.permute.xlu1 %88  ;;  %693 = vmatprep.subr.mxu0 %v831_v29 }
 0x10c   :  { %787 = vtanh.f32 %v544_v48  ;;  %v242_v32 = vadd.f32 %v226_v61, %v89_v15 }
 0x110   :  { %v278_v54 = vpop.permute.xlu1 %277 }
 0x111   :  { %v326_v42 = vmul.f32 %v1123_v25, %v278_v54  ;;  %v258_v54 = vpop.permute.xlu0 %257 }
 0x112   :  { %v321_v61 = vmul.f32 %v1123_v25, %v258_v54 }
 0x113   :  { %v342_v1 = vadd.f32 %v326_v42, %v242_v32 }
 0x115   :  { %v382_v53 = vpop.permute.xlu1 %381 }
 0x116   :  { %v427_v12 = vmul.f32 %v1127_v30, %v382_v53 }
 0x118   :  { %v786_v63 = vpop.eup %785  ;;  %v443_v48 = vadd.f32 %v427_v12, %v343_v26 }
 0x119   :  { %694 = vmatpush3.msra.mxu0 %v786_v63  ;;  %v788_v38 = vpop.eup %787 }
 0x11a   :  { %v84_v60 = vpop.permute.xlu1 %83  ;;  %695 = vmatprep.subr.mxu0 %v831_v29 }
 0x11b   :  { %v241_v27 = vadd.f32 %v225_v7, %v84_v60  ;;  %696 = vmatpush3.msra.mxu0 %v788_v38  ;;  %v222_v7 = vmul.f32 %v1113_v17, %v1068_v56 }
 0x11c   :  { %697 = vmatprep.subr.mxu0 %v831_v29 }
 0x11d   :  { %v341_v33 = vadd.f32 %v325_v16, %v241_v27  ;;  %v254_v16 = vpop.permute.xlu0 %253 }
 0x11e   :  { %v159_v44 = vpop.permute.xlu1 %158  ;;  %v320_v42 = vmul.f32 %v1123_v25, %v254_v16 }
 0x11f   :  { %v441_v52 = vadd.f32 %v425_v51, %v341_v33  ;;  %v224_v5 = vmul.f32 %v1113_v17, %v159_v44  ;;  %v238_v51 = vadd.f32 %v222_v7, %v1010_v34 }
 0x121   :  { %v541_v21 = vadd.f32 %v525_v41, %v441_v52  ;;  %v240_v43 = vadd.f32 %v224_v5, %v1065_v55  ;;  %v462_v44 = vpop.permute.xlu0 %461 }
 0x122   :  { %v522_v47 = vmul.f32 %v1134_v4, %v462_v44 }
 0x123   :  { %v378_v46 = vpop.permute.xlu1 %377 }
 0x124   :  { %v426_v2 = vmul.f32 %v1127_v30, %v378_v46 }
 0x126   :  { %v442_v6 = vadd.f32 %v426_v2, %v342_v1  ;;  %v454_v2 = vpop.permute.xlu0 %453 }
 0x128   :  { %v482_v10 = vpop.permute.xlu1 %481 }
 0x129   :  { %v527_v59 = vmul.f32 %v1134_v4, %v482_v10 }
 0x12b   :  { %v543_v0 = vadd.f32 %v527_v59, %v443_v48 }
 0x12d   :  { %789 = vtanh.f32 %v543_v0  ;;  %v154_v62 = vpop.permute.xlu1 %153 }
 0x12e   :  { %v223_v38 = vmul.f32 %v1113_v17, %v154_v62 }
 0x132   :  { %v270_v13 = vpop.permute.xlu1 %269 }
 0x133   :  { %v324_v28 = vmul.f32 %v1123_v25, %v270_v13 }
 0x135   :  { %v340_v19 = vadd.f32 %v324_v28, %v240_v43 }
 0x137   :  { %v478_v49 = vpop.permute.xlu1 %477 }
 0x138   :  { %v526_v24 = vmul.f32 %v1134_v4, %v478_v49 }
 0x13a   :  { %v790_v31 = vpop.eup %789  ;;  %v542_v37 = vadd.f32 %v526_v24, %v442_v6  ;;  %v520_v24 = vmul.f32 %v1134_v4, %v454_v2 }
 0x13b   :  { %698 = vmatpush3.msra.mxu0 %v790_v31 }
 0x13c   :  { %791 = vtanh.f32 %v542_v37  ;;  %v74_v45 = vpop.permute.xlu1 %73  ;;  %699 = vmatprep.subr.mxu0 %v831_v29 }
 0x13d   :  { %793 = vtanh.f32 %v541_v21  ;;  %v239_v27 = vadd.f32 %v223_v38, %v74_v45  ;;  %v423_v21 = vmul.f32 %v1127_v30, %v1116_v22 }
 0x141   :  { %v266_v57 = vpop.permute.xlu1 %265 }
 0x142   :  { %v323_v60 = vmul.f32 %v1123_v25, %v266_v57 }
 0x144   :  { %v339_v52 = vadd.f32 %v323_v60, %v239_v27 }
 0x146   :  { %v370_v39 = vpop.permute.xlu1 %369  ;;  %v439_v40 = vadd.f32 %v423_v21, %v339_v52 }
 0x147   :  { %v424_v3 = vmul.f32 %v1127_v30, %v370_v39  ;;  %v568_v39 = vld [vmem:[%s1274_s3] sm:$0x1] }
 0x149   :  { %v792_v58 = vpop.eup %791  ;;  %v440_v15 = vadd.f32 %v424_v3, %v340_v19 }
 0x14a   :  { %700 = vmatpush3.msra.mxu0 %v792_v58  ;;  %v794_v14 = vpop.eup %793 }
 0x14b   :  { %v144_v20 = vpop.permute.xlu1 %143  ;;  %701 = vmatprep.subr.mxu0 %v831_v29 }
 0x14c   :  { %702 = vmatpush3.msra.mxu0 %v794_v14  ;;  %v221_v59 = vmul.f32 %v1113_v17, %v144_v20 }
 0x14d   :  { %703 = vmatprep.subr.mxu0 %v831_v29 }
 0x14e   :  { %v237_v62 = vadd.f32 %v221_v59, %v1015_v36 }
 0x150   :  { %v262_v9 = vpop.permute.xlu1 %261  ;;  %v337_v49 = vadd.f32 %v321_v61, %v237_v62 }
 0x151   :  { %v322_v55 = vmul.f32 %v1123_v25, %v262_v9 }
 0x153   :  { %v338_v50 = vadd.f32 %v322_v55, %v238_v51 }
 0x155   :  { %v470_v18 = vpop.permute.xlu1 %469 }
 0x156   :  { %v524_v53 = vmul.f32 %v1134_v4, %v470_v18 }
 0x158   :  { %v540_v23 = vadd.f32 %v524_v53, %v440_v15 }
 0x15a   :  { %795 = vtanh.f32 %v540_v23  ;;  %v139_v63 = vpop.permute.xlu1 %138 }
 0x15b   :  { %v220_v34 = vmul.f32 %v1113_v17, %v139_v63 }
 0x15d   :  { %v236_v22 = vadd.f32 %v220_v34, %v1012_v35 }
 0x15f   :  { %v362_v41 = vpop.permute.xlu1 %361  ;;  %v336_v17 = vadd.f32 %v320_v42, %v236_v22 }
 0x160   :  { %v422_v33 = vmul.f32 %v1127_v30, %v362_v41 }
 0x162   :  { %v438_v56 = vadd.f32 %v422_v33, %v338_v50 }
 0x164   :  { %v466_v46 = vpop.permute.xlu1 %465  ;;  %v538_v10 = vadd.f32 %v522_v47, %v438_v56 }
 0x165   :  { %v523_v12 = vmul.f32 %v1134_v4, %v466_v46 }
 0x167   :  { %v796_v26 = vpop.eup %795  ;;  %v539_v48 = vadd.f32 %v523_v12, %v439_v40 }
 0x168   :  { %704 = vmatpush3.msra.mxu0 %v796_v26 }
 0x169   :  { %797 = vtanh.f32 %v539_v48  ;;  %v358_v0 = vpop.permute.xlu1 %357  ;;  %705 = vmatprep.subr.mxu0 %v831_v29 }
 0x16a   :  { %799 = vtanh.f32 %v538_v10  ;;  %v421_v1 = vmul.f32 %v1127_v30, %v358_v0 }
 0x16c   :  { %v437_v35 = vadd.f32 %v421_v1, %v337_v49 }
 0x16d   :  { %v354_v13 = vpop.permute.xlu1 %353 }
 0x16e   :  { %v420_v32 = vmul.f32 %v1127_v30, %v354_v13 }
 0x170   :  { %v436_v6 = vadd.f32 %v420_v32, %v336_v17 }
 0x172   :  { %v458_v31 = vpop.permute.xlu1 %457  ;;  %v536_v36 = vadd.f32 %v520_v24, %v436_v6 }
 0x173   :  { %v521_v37 = vmul.f32 %v1134_v4, %v458_v31 }
 0x175   :  { %v537_v45 = vadd.f32 %v521_v37, %v437_v35 }
 0x176   :  { %v798_v57 = vpop.eup %797 }
 0x177   :  { %801 = vtanh.f32 %v537_v45  ;;  %706 = vmatpush3.msra.mxu0 %v798_v57  ;;  %v800_v25 = vpop.eup %799  ;;  %v573_v4 = vpop.permute.xlu1 %572 }
 0x178   :  { %707 = vmatprep.subr.mxu0 %v831_v29  ;;  %803 = vtanh.f32 %v536_v36  ;;  %v578_v14 = vrot.slane %v573_v4, %v218_v11 }
 0x179   :  { %708 = vmatpush3.msra.mxu0 %v800_v25 }
 0x17a   :  { %709 = vmatprep.subr.mxu0 %v831_v29 }
 0x184   :  { %v802_v30 = vpop.eup %801 }
 0x185   :  { %710 = vmatpush3.msra.mxu0 %v802_v30  ;;  %v804_v58 = vpop.eup %803 }
 0x186   :  { %711 = vmatprep.subr.mxu0 %v831_v29 }
 0x187   :  { %712 = vmatpush3.msra.mxu0 %v804_v58 }
 0x188   :  { %714 = vmatmul.mubr.f32.vlgmr.msra.gmra.mxu0 %v568_v39 }
 0x248   :  { %v645_v20 = vpop.f32.mrf.mxu0 }
 0x249   :  { %v646_v5 = vadd.f32 %v645_v20, %v578_v14 }
 0x24a   :  { %v715_v28 = vpop.f32.mrf.mxu0 }
 0x24b   :  { %649 = vst [vmem:[#allocation3] sm:$0x1] %v646_v5 }
 0x24c   :  { %816 = shalt.err (!%p813_p4)
}
 0x24d   :  { %659 = dma.vmem_to_hbm [thread:$0]  %s657_s8, 16, %s1276_s5, [#allocation4]  }
 0x24e   :  { %825 = dma.done.wait [#allocation4], 16  }
 0x24f   :  { %826 = vsyncadd [#allocation4], 4294967280 }
 0x250   :  { %663 = vsyncpa [#allocation4], 1 }

</bundles_post_ra>
